<compile_context>
chip_gen: v7x
topology: tpu7x:2x2x1
jax: 0.10.0
libtpu: 0.0.40
codegen_flags: <defaults>
</compile_context>

<pallas_src>
import functools

import jax
import jax.numpy as jnp
from jax.experimental import pallas as pl
from jax.experimental.pallas import tpu as pltpu


def _termination_kernel(z_ref, w1t_ref, b1_ref, w2_ref, b2_ref, out_ref,
                        *, apply_sigmoid: bool):
    # z_ref  : (TB, D)    w1t_ref: (H, D)    b1_ref: (H, 1)
    # w2_ref : (H, 1)     b2_ref : (1,) in SMEM      out_ref: (1, TB)
    #
    # Layer 1 on the MXU, emitting the *transposed* hidden activation
    # directly (batch on lanes), f32 accumulation.  Contraction is on the
    # last dim of both operands (D), so only the narrow D=32 side needs any
    # relayout — no (TB, H) transpose is ever materialized.
    h_t = jax.lax.dot_general(
        w1t_ref[...], z_ref[...],
        dimension_numbers=(((1,), (1,)), ((), ())),
        preferred_element_type=jnp.float32)                 # (H, TB) f32
    h_t = jnp.maximum(h_t + b1_ref[...], 0.0)               # bias + ReLU

    # Layer 2 (output dim 1): VPU broadcast-multiply with the w2 column and an
    # XLU cross-sublane reduce — no 1-wide MXU matmul.
    logit = jnp.sum(h_t * w2_ref[...], axis=0, keepdims=True)   # (1, TB)
    logit = logit + b2_ref[0]                                    # SMEM scalar

    if apply_sigmoid:
        # EUP transcendental path; same formulation as jax.nn.sigmoid ref.
        out_ref[...] = jax.nn.sigmoid(logit).astype(out_ref.dtype)
    else:
        out_ref[...] = logit.astype(out_ref.dtype)


def _round_up(x, m):
    return (x + m - 1) // m * m


def _cdiv(a, b):
    return (a + b - 1) // b


def termination_prediction(z_core, w1, b1, w2, b2, *, return_logit=False,
                           max_tile_b=8192):
    """Pallas forward of TerminationPredictionModel.

    z_core: [B, D]        (f32, or bf16 if the upstream pipeline is bf16)
    w1:     [D, H], b1: [H]      (stored as [in, out] == W.T)
    w2:     [H, 1], b2: [1]
    returns: [B]  (sigmoid(logit), or logit if return_logit=True)
    """
    B, D = z_core.shape
    H = w1.shape[1]

    # Lane-dense batch tiling: tile_b is a multiple of 128 (lane width).
    # No host-side padding — Pallas masks the ragged last block.
    b128 = _round_up(B, 128)
    tile_b = min(b128, max_tile_b)
    if b128 >= 256:
        # Keep >= 2 grid steps so v7x's second TensorCore gets work.
        tile_b = min(tile_b, _round_up(_cdiv(b128, 2), 128))
    num_tiles = _cdiv(B, tile_b)

    # Compute in Z's own dtype (bf16 only if Z is already bf16 upstream);
    # biases / w2 stay f32 since accumulation is f32.
    w1t = jnp.asarray(w1, z_core.dtype).T                  # (H, D)
    b1_col = jnp.asarray(b1, jnp.float32).reshape(H, 1)    # (H, 1)
    w2_col = jnp.asarray(w2, jnp.float32).reshape(H, 1)    # (H, 1)
    b2_s = jnp.asarray(b2, jnp.float32).reshape(1)         # (1,) -> SMEM

    kernel = functools.partial(_termination_kernel,
                               apply_sigmoid=not return_logit)

    out = pl.pallas_call(
        kernel,
        out_shape=jax.ShapeDtypeStruct((1, B), jnp.float32),
        grid_spec=pltpu.PrefetchScalarGridSpec(
            num_scalar_prefetch=0,
            grid=(num_tiles,),
            in_specs=[
                pl.BlockSpec((tile_b, D), lambda i: (i, 0)),   # Z (streamed)
                pl.BlockSpec((H, D), lambda i: (0, 0)),        # W1ᵀ (resident)
                pl.BlockSpec((H, 1), lambda i: (0, 0)),        # b1 column
                pl.BlockSpec((H, 1), lambda i: (0, 0)),        # W2 column
                pl.BlockSpec(memory_space=pltpu.MemorySpace.SMEM),  # b2 scalar
            ],
            out_specs=pl.BlockSpec((1, tile_b), lambda i: (0, i)),  # lane-dense
        ),
        compiler_params=pltpu.CompilerParams(
            dimension_semantics=("parallel",),       # megacore sharding (v7x)
            vmem_limit_bytes=32 * 1024 * 1024),      # safe on v5e/v6e/v7x
    )(z_core, w1t, b1_col, w2_col, b2_s)

    return out[0, :]   # squeeze(-1)


def _reference(z_core, w1, b1, w2, b2, return_logit=False):
    h = jnp.maximum(z_core @ w1 + b1, 0.0)
    logit = (h @ w2 + b2)[:, 0]
    return logit if return_logit else jax.nn.sigmoid(logit)


if __name__ == "__main__":
    # Small, module-consistent shapes.
    B = 16                      # batch of core graph vectors
    CORE_DIM = 32               # core_graph_vector_dim
    HIDDEN = 128                # hidden_dim (module default)

    key = jax.random.PRNGKey(0)
    k_z, k_w1, k_b1, k_w2, k_b2, k_z2 = jax.random.split(key, 6)

    z_core = jax.random.normal(k_z, (B, CORE_DIM), dtype=jnp.float32)

    # Deterministic synthetic parameters (shapes from the module's __init__).
    w1 = jax.random.normal(k_w1, (CORE_DIM, HIDDEN), dtype=jnp.float32) * 0.1
    b1 = jax.random.normal(k_b1, (HIDDEN,), dtype=jnp.float32) * 0.1
    w2 = jax.random.normal(k_w2, (HIDDEN, 1), dtype=jnp.float32) * 0.1
    b2 = jax.random.normal(k_b2, (1,), dtype=jnp.float32) * 0.1

    # sigmoid output path
    probs = jax.block_until_ready(
        termination_prediction(z_core, w1, b1, w2, b2, return_logit=False))
    # logit output path
    logits = jax.block_until_ready(
        termination_prediction(z_core, w1, b1, w2, b2, return_logit=True))

    ref_probs = _reference(z_core, w1, b1, w2, b2, return_logit=False)
    ref_logits = _reference(z_core, w1, b1, w2, b2, return_logit=True)

    assert probs.shape == (B,) and logits.shape == (B,)
    assert jnp.allclose(probs, ref_probs, atol=1e-5, rtol=1e-5)
    assert jnp.allclose(logits, ref_logits, atol=1e-5, rtol=1e-5)

    # Ragged batch exercising >= 2 grid steps and the masked last tile
    # (no host-side padding path).
    B2 = 200
    z2 = jax.random.normal(k_z2, (B2, CORE_DIM), dtype=jnp.float32)
    probs2 = jax.block_until_ready(
        termination_prediction(z2, w1, b1, w2, b2, return_logit=False))
    assert probs2.shape == (B2,)
    assert jnp.allclose(probs2, _reference(z2, w1, b1, w2, b2, False),
                        atol=1e-5, rtol=1e-5)

    print("KERNEL_OK")
</pallas_src>

<mosaic_0001>
module attributes {stable_mosaic.version = 11 : i64} {
  func.func @_termination_kernel(%arg0: i32, %arg1: memref<128x32xf32, #tpu.memory_space<vmem>>, %arg2: memref<128x32xf32, #tpu.memory_space<vmem>>, %arg3: memref<128x1xf32, #tpu.memory_space<vmem>>, %arg4: memref<128x1xf32, #tpu.memory_space<vmem>>, %arg5: memref<1xf32, #tpu.memory_space<smem>>, %arg6: memref<1x128xf32, #tpu.memory_space<vmem>>) attributes {dimension_semantics = [#tpu.dimension_semantics<parallel>], iteration_bounds = array<i64: 1>, scalar_prefetch = 0 : i64, scratch_operands = 0 : i64, tpu.core_type = #tpu.core_type<tc>, window_params = [{transform_indices = @transform_0, window_bounds = array<i64: 128, 32>}, {pipeline_mode = #tpu.pipeline_mode<synchronous>, transform_indices = @transform_1, window_bounds = array<i64: 128, 32>}, {pipeline_mode = #tpu.pipeline_mode<synchronous>, transform_indices = @transform_2, window_bounds = array<i64: 128, 1>}, {pipeline_mode = #tpu.pipeline_mode<synchronous>, transform_indices = @transform_3, window_bounds = array<i64: 128, 1>}, {transform_indices = @transform_4, window_bounds = array<i64: 1>}, {transform_indices = @transform_5, window_bounds = array<i64: 1, 128>}]} {
    %c0 = arith.constant 0 : index
    %c0_0 = arith.constant 0 : index
    %0 = vector.load %arg2[%c0, %c0_0] : memref<128x32xf32, #tpu.memory_space<vmem>>, vector<128x32xf32>
    %c0_1 = arith.constant 0 : index
    %c0_2 = arith.constant 0 : index
    %1 = vector.load %arg1[%c0_1, %c0_2] : memref<128x32xf32, #tpu.memory_space<vmem>>, vector<128x32xf32>
    %cst = arith.constant dense<0.000000e+00> : vector<128x128xf32>
    %2 = tpu.matmul %0, %1, %cst {dimension_numbers = #tpu.dot_dimension_numbers<[1], [1], [0], [0], [0, 0, 1, 0], [], []>} : vector<128x32xf32>, vector<128x32xf32>, vector<128x128xf32> -> vector<128x128xf32>
    %c0_3 = arith.constant 0 : index
    %c0_4 = arith.constant 0 : index
    %3 = vector.load %arg3[%c0_3, %c0_4] : memref<128x1xf32, #tpu.memory_space<vmem>>, vector<128x1xf32>
    %4 = vector.broadcast %3 : vector<128x1xf32> to vector<128x128xf32>
    %5 = arith.addf %2, %4 : vector<128x128xf32>
    %cst_5 = arith.constant 0.000000e+00 : f32
    %6 = vector.broadcast %cst_5 : f32 to vector<128x128xf32>
    %7 = arith.maximumf %5, %6 : vector<128x128xf32>
    %c0_6 = arith.constant 0 : index
    %c0_7 = arith.constant 0 : index
    %8 = vector.load %arg4[%c0_6, %c0_7] : memref<128x1xf32, #tpu.memory_space<vmem>>, vector<128x1xf32>
    %9 = vector.broadcast %8 : vector<128x1xf32> to vector<128x128xf32>
    %10 = arith.mulf %7, %9 : vector<128x128xf32>
    %cst_8 = arith.constant dense<0.000000e+00> : vector<128xf32>
    %11 = vector.multi_reduction <add>, %10, %cst_8 [0] : vector<128x128xf32> to vector<128xf32>
    %12 = vector.shape_cast %11 : vector<128xf32> to vector<1x128xf32>
    %c0_9 = arith.constant 0 : index
    %13 = memref.load %arg5[%c0_9] : memref<1xf32, #tpu.memory_space<smem>>
    %14 = vector.broadcast %13 : f32 to vector<1x128xf32>
    %15 = arith.addf %12, %14 : vector<1x128xf32>
    %16 = arith.negf %15 : vector<1x128xf32>
    %17 = math.exp %16 : vector<1x128xf32>
    %cst_10 = arith.constant 1.000000e+00 : f32
    %18 = vector.broadcast %cst_10 : f32 to vector<1x128xf32>
    %19 = arith.addf %18, %17 : vector<1x128xf32>
    %20 = arith.divf %18, %19 : vector<1x128xf32>
    %c0_11 = arith.constant 0 : index
    %c0_12 = arith.constant 0 : index
    %21 = vector.load %arg6[%c0_11, %c0_12] : memref<1x128xf32, #tpu.memory_space<vmem>>, vector<1x128xf32>
    tpu.vector_store %arg6[%c0_11, %c0_12], %20 {strides = array<i32>} : memref<1x128xf32, #tpu.memory_space<vmem>>, vector<1x128xf32>,
    return
  }
  func.func @transform_0(%arg0: i32) -> (i32, i32) {
    %c0_i32 = arith.constant 0 : i32
    %c0_i32_0 = arith.constant 0 : i32
    return %arg0, %c0_i32 : i32, i32
  }
  func.func @transform_1(%arg0: i32) -> (i32, i32) {
    %c0_i32 = arith.constant 0 : i32
    %c0_i32_0 = arith.constant 0 : i32
    %c0_i32_1 = arith.constant 0 : i32
    return %c0_i32, %c0_i32_0 : i32, i32
  }
  func.func @transform_2(%arg0: i32) -> (i32, i32) {
    %c0_i32 = arith.constant 0 : i32
    %c0_i32_0 = arith.constant 0 : i32
    %c0_i32_1 = arith.constant 0 : i32
    return %c0_i32, %c0_i32_0 : i32, i32
  }
  func.func @transform_3(%arg0: i32) -> (i32, i32) {
    %c0_i32 = arith.constant 0 : i32
    %c0_i32_0 = arith.constant 0 : i32
    %c0_i32_1 = arith.constant 0 : i32
    return %c0_i32, %c0_i32_0 : i32, i32
  }
  func.func @transform_4(%arg0: i32) -> i32 {
    %c0_i32 = arith.constant 0 : i32
    %c0_i32_0 = arith.constant 0 : i32
    return %c0_i32 : i32
  }
  func.func @transform_5(%arg0: i32) -> (i32, i32) {
    %c0_i32 = arith.constant 0 : i32
    %c0_i32_0 = arith.constant 0 : i32
    return %c0_i32, %arg0 : i32, i32
  }
}

</mosaic_0001>

<bundles_post_ra>
// kernel: tpu_custom_call.1
= control target key start
LH: loop header
LB: loop body
LE: loop exit
PB: predicated region body
PF: predicated region fallthrough
CT: control target
= control target key end

     0   :  { %vm150_vm0 = vcmask 261120   ;;  %v782_v6 = vmov 0   ;;  %s1107_s0 = inlined_call_operand.vmem [shape: f32[16,32], index: 0, kind: input, shape index: {}]   ;;  %s1108_s1 = inlined_call_operand.vmem [shape: f32[128,32], index: 1, kind: input, shape index: {}]   ;;  %s1109_s2 = inlined_call_operand.vmem [shape: f32[128,1], index: 2, kind: input, shape index: {}]   ;;  %s1110_s3 = inlined_call_operand.vmem [shape: f32[128,1], index: 3, kind: input, shape index: {}]   ;;  %s1111_s4 = inlined_call_operand.<no memory space> [shape: f32[1], index: 4, kind: input, shape index: {}]   ;;  %s1112_s5 = inlined_call_operand.hbm [shape: f32[1,16], index: 5, kind: output, shape index: {}]  }
   0x1   :  { %v38_v0 = vld [vmem:[%s1107_s0] sm:$0xff]  ;;  %v39_v1 = vld [vmem:[%s1107_s0 + $0x8] sm:$0xff]  ;;  %v40_v2 = vld [vmem:[%s1107_s0 + $0x10] sm:$0xff]  ;;  %752 = vset.pattern.permute.xlu0 %v782_v6  ;;  %753 = vset.pattern.permute.xlu1 %v782_v6 }
   0x2   :  { %v686_v3 = vpack.c.bf16 %v39_v1, %v38_v0  ;;  %vm825_vm1 = vmpackc.low %vm150_vm0, %vm150_vm0  ;;  %v41_v5 = vld [vmem:[%s1107_s0 + $0x18] sm:$0xff]  ;;  %v42_v8 = vld [vmem:[%s1107_s0 + $0x20] sm:$0xff] }
   0x3   :  { %v692_v7 = vpack.c.bf16 %v41_v5, %v40_v2  ;;  %v43_v9 = vld [vmem:[%s1107_s0 + $0x28] sm:$0xff]  ;;  %v54_v10 = vld [vmem:[%s1109_s2] sm:$0xff]  ;;  %v56_v11 = vld [vmem:[%s1109_s2 + $0x10] sm:$0xff] }
   0x4   :  { %688 = vmatprep.subr.msk.bf16.mxu0 %vm825_vm1, %v686_v3  ;;  %734 = vmatprep.subr.msk.bf16.mxu1 %vm825_vm1, %v686_v3  ;;  %v22_v12 = vld [vmem:[%s1108_s1] sm:$0xff]  ;;  %v55_v14 = vld [vmem:[%s1109_s2 + $0x8] sm:$0xff]  ;;  %v57_v15 = vld [vmem:[%s1109_s2 + $0x18] sm:$0xff]  ;;  %v698_v16 = vpack.c.bf16 %v43_v9, %v42_v8 }
   0x5   :  { %691 = vmatpush3.bf16.xpose.msk.msra.mxu0 %vm825_vm1, %v686_v3  ;;  %742 = vmatpush3.bf16.xpose.msk.msra.mxu1 %vm825_vm1, %v686_v3  ;;  %v30_v13 = vld [vmem:[%s1108_s1 + $0x40] sm:$0xff]  ;;  %v409_v18 = vld [vmem:[%s1110_s3 + $0x8] sm:$0xff]  ;;  %v44_v19 = vld [vmem:[%s1107_s0 + $0x30] sm:$0xff] }
   0x6   :  { %694 = vmatprep.subr.msk.bf16.mxu0 %vm825_vm1, %v692_v7  ;;  %735 = vmatprep.subr.msk.bf16.mxu1 %vm825_vm1, %v692_v7  ;;  %v408_v17 = vld [vmem:[%s1110_s3] sm:$0xff]  ;;  %v45_v20 = vld [vmem:[%s1107_s0 + $0x38] sm:$0xff]  ;;  %v410_v22 = vld [vmem:[%s1110_s3 + $0x10] sm:$0xff] }
   0x7   :  { %72 = vperm.xlu0 %752, %v54_v10   ;;  %82 = vperm.xlu1 %753, %v56_v11   ;;  %v58_v21 = vld [vmem:[%s1109_s2 + $0x20] sm:$0xff]  ;;  %v704_v23 = vpack.c.bf16 %v45_v20, %v44_v19  ;;  %v59_v24 = vld [vmem:[%s1109_s2 + $0x28] sm:$0xff]  ;;  %v411_v25 = vld [vmem:[%s1110_s3 + $0x18] sm:$0xff] }
   0x8   :  { %662 = vmatprep.mubr.msk.f32.mxu0 %vm150_vm0, %v22_v12  ;;  %674 = vmatprep.mubr.msk.f32.mxu1 %vm150_vm0, %v30_v13 }
   0xb   :  { %77 = vperm.xlu0 %752, %v55_v14   ;;  %87 = vperm.xlu1 %753, %v57_v15  }
   0xd   :  { %697 = vmatpush3.bf16.xpose.msk.msra.mxu0 %vm825_vm1, %v692_v7  ;;  %743 = vmatpush3.bf16.xpose.msk.msra.mxu1 %vm825_vm1, %v692_v7 }
   0xe   :  { %700 = vmatprep.subr.msk.bf16.mxu0 %vm825_vm1, %v698_v16  ;;  %736 = vmatprep.subr.msk.bf16.mxu1 %vm825_vm1, %v698_v16 }
   0xf   :  { %426 = vperm.xlu0 %752, %v408_v17   ;;  %431 = vperm.xlu1 %753, %v409_v18  }
  0x13   :  { %92 = vperm.xlu0 %752, %v58_v21   ;;  %436 = vperm.xlu1 %753, %v410_v22  }
  0x15   :  { %703 = vmatpush3.bf16.xpose.msk.msra.mxu0 %vm825_vm1, %v698_v16  ;;  %744 = vmatpush3.bf16.xpose.msk.msra.mxu1 %vm825_vm1, %v698_v16 }
  0x16   :  { %706 = vmatprep.subr.msk.bf16.mxu0 %vm825_vm1, %v704_v23  ;;  %737 = vmatprep.subr.msk.bf16.mxu1 %vm825_vm1, %v704_v23 }
  0x17   :  { %11 = vsyncpa [#allocation4], 0  ;;  %v46_v26 = vld [vmem:[%s1107_s0 + $0x40] sm:$0xff]  ;;  %v47_v27 = vld [vmem:[%s1107_s0 + $0x48] sm:$0xff]  ;;  %97 = vperm.xlu0 %752, %v59_v24   ;;  %441 = vperm.xlu1 %753, %v411_v25   ;;  %s783_s17 = smov [#allocation3]  }
  0x18   :  { %v60_v28 = vld [vmem:[%s1109_s2 + $0x30] sm:$0xff]  ;;  %v412_v29 = vld [vmem:[%s1110_s3 + $0x20] sm:$0xff]  ;;  %v710_v30 = vpack.c.bf16 %v47_v27, %v46_v26  ;;  %v61_v31 = vld [vmem:[%s1109_s2 + $0x38] sm:$0xff]  ;;  %s557_s18 = sshll.u32 %s783_s17, 4  ;;  %s558_s18 = int_to_ptr.vmem [resolvable:$true] %s557_s18 }
  0x19   :  { %v413_v32 = vld [vmem:[%s1110_s3 + $0x28] sm:$0xff]  ;;  %v48_v33 = vld [vmem:[%s1107_s0 + $0x50] sm:$0xff]  ;;  %v49_v34 = vld [vmem:[%s1107_s0 + $0x58] sm:$0xff]  ;;  %s758_s19 = scalar_lea.vmem %s558_s18, 16  ;;  %s762_s20 = scalar_lea.vmem %s558_s18, 32 }
  0x1a   :  { %v62_v35 = vld [vmem:[%s1109_s2 + $0x40] sm:$0xff]  ;;  %v414_v36 = vld [vmem:[%s1110_s3 + $0x30] sm:$0xff]  ;;  %v716_v37 = vpack.c.bf16 %v49_v34, %v48_v33  ;;  %v63_v38 = vld [vmem:[%s1109_s2 + $0x48] sm:$0xff]  ;;  %p759_p0 = scmp.ne.s32.totalorder %s558_s18, %s758_s19  ;;  %p763_p1 = scmp.lt.s32.totalorder %s558_s18, %s558_s18 }
  0x1b   :  { %102 = vperm.xlu0 %752, %v60_v28   ;;  %446 = vperm.xlu1 %753, %v412_v29   ;;  %v415_v39 = vld [vmem:[%s1110_s3 + $0x38] sm:$0xff]  ;;  %v50_v40 = vld [vmem:[%s1107_s0 + $0x60] sm:$0xff]  ;;  %v51_v41 = vld [vmem:[%s1107_s0 + $0x68] sm:$0xff]  ;;  %p764_p2 = scmp.lt.s32.totalorder %s762_s20, %s758_s19 }
  0x1c   :  { %v64_v42 = vld [vmem:[%s1109_s2 + $0x50] sm:$0xff]  ;;  %v416_v43 = vld [vmem:[%s1110_s3 + $0x40] sm:$0xff]  ;;  %v722_v44 = vpack.c.bf16 %v51_v41, %v50_v40  ;;  %v65_v45 = vld [vmem:[%s1109_s2 + $0x58] sm:$0xff] }
  0x1d   :  { %709 = vmatpush3.bf16.xpose.msk.msra.mxu0 %vm825_vm1, %v704_v23  ;;  %745 = vmatpush3.bf16.xpose.msk.msra.mxu1 %vm825_vm1, %v704_v23  ;;  %v417_v46 = vld [vmem:[%s1110_s3 + $0x48] sm:$0xff]  ;;  %v52_v47 = vld [vmem:[%s1107_s0 + $0x70] sm:$0xff]  ;;  %v53_v48 = vld [vmem:[%s1107_s0 + $0x78] sm:$0xff]  ;;  %p765_p3 = por %p764_p2, %p763_p1 }
  0x1e   :  { %712 = vmatprep.subr.msk.bf16.mxu0 %vm825_vm1, %v710_v30  ;;  %738 = vmatprep.subr.msk.bf16.mxu1 %vm825_vm1, %v710_v30  ;;  %v66_v49 = vld [vmem:[%s1109_s2 + $0x60] sm:$0xff]  ;;  %v418_v50 = vld [vmem:[%s1110_s3 + $0x50] sm:$0xff]  ;;  %v728_v51 = vpack.c.bf16 %v53_v48, %v52_v47  ;;  %v67_v52 = vld [vmem:[%s1109_s2 + $0x68] sm:$0xff] }
  0x1f   :  { %107 = vperm.xlu0 %752, %v61_v31   ;;  %451 = vperm.xlu1 %753, %v413_v32   ;;  %v419_v53 = vld [vmem:[%s1110_s3 + $0x58] sm:$0xff]  ;;  %v68_v54 = vld [vmem:[%s1109_s2 + $0x70] sm:$0xff]  ;;  %v420_v55 = vld [vmem:[%s1110_s3 + $0x60] sm:$0xff]  ;;  %p766_p4 = pnand %p765_p3, %p759_p0 }
  0x20   :  { %v69_v56 = vld [vmem:[%s1109_s2 + $0x78] sm:$0xff]  ;;  %v421_v57 = vld [vmem:[%s1110_s3 + $0x68] sm:$0xff]  ;;  %v422_v58 = vld [vmem:[%s1110_s3 + $0x70] sm:$0xff] }
  0x21   :  { %v23_v59 = vld [vmem:[%s1108_s1 + $0x8] sm:$0xff]  ;;  %v24_v61 = vld [vmem:[%s1108_s1 + $0x10] sm:$0xff]  ;;  %v423_v63 = vld [vmem:[%s1110_s3 + $0x78] sm:$0xff] }
  0x22   :  { %v31_v60 = vld [vmem:[%s1108_s1 + $0x48] sm:$0xff]  ;;  %v32_v62 = vld [vmem:[%s1108_s1 + $0x50] sm:$0xff]  ;;  %v25_v0 = vld [vmem:[%s1108_s1 + $0x18] sm:$0xff] }
  0x23   :  { %112 = vperm.xlu0 %752, %v62_v35   ;;  %456 = vperm.xlu1 %753, %v414_v36   ;;  %v33_v1 = vld [vmem:[%s1108_s1 + $0x58] sm:$0xff]  ;;  %v26_v2 = vld [vmem:[%s1108_s1 + $0x20] sm:$0xff]  ;;  %v27_v4 = vld [vmem:[%s1108_s1 + $0x28] sm:$0xff] }
  0x24   :  { %v34_v3 = vld [vmem:[%s1108_s1 + $0x60] sm:$0xff]  ;;  %v35_v5 = vld [vmem:[%s1108_s1 + $0x68] sm:$0xff]  ;;  %v28_v6 = vld [vmem:[%s1108_s1 + $0x30] sm:$0xff] }
  0x25   :  { %715 = vmatpush3.bf16.xpose.msk.msra.mxu0 %vm825_vm1, %v710_v30  ;;  %746 = vmatpush3.bf16.xpose.msk.msra.mxu1 %vm825_vm1, %v710_v30  ;;  %v36_v7 = vld [vmem:[%s1108_s1 + $0x70] sm:$0xff]  ;;  %v29_v8 = vld [vmem:[%s1108_s1 + $0x38] sm:$0xff] }
  0x26   :  { %718 = vmatprep.subr.msk.bf16.mxu0 %vm825_vm1, %v716_v37  ;;  %739 = vmatprep.subr.msk.bf16.mxu1 %vm825_vm1, %v716_v37  ;;  %v37_v9 = vld [vmem:[%s1108_s1 + $0x78] sm:$0xff] }
  0x27   :  { %117 = vperm.xlu0 %752, %v63_v38   ;;  %461 = vperm.xlu1 %753, %v415_v39  }
  0x2b   :  { %122 = vperm.xlu0 %752, %v64_v42   ;;  %466 = vperm.xlu1 %753, %v416_v43  }
  0x2d   :  { %721 = vmatpush3.bf16.xpose.msk.msra.mxu0 %vm825_vm1, %v716_v37  ;;  %747 = vmatpush3.bf16.xpose.msk.msra.mxu1 %vm825_vm1, %v716_v37 }
  0x2e   :  { %724 = vmatprep.subr.msk.bf16.mxu0 %vm825_vm1, %v722_v44  ;;  %740 = vmatprep.subr.msk.bf16.mxu1 %vm825_vm1, %v722_v44 }
  0x2f   :  { %127 = vperm.xlu0 %752, %v65_v45   ;;  %471 = vperm.xlu1 %753, %v417_v46  }
  0x33   :  { %132 = vperm.xlu0 %752, %v66_v49   ;;  %476 = vperm.xlu1 %753, %v418_v50  }
  0x35   :  { %727 = vmatpush3.bf16.xpose.msk.msra.mxu0 %vm825_vm1, %v722_v44  ;;  %748 = vmatpush3.bf16.xpose.msk.msra.mxu1 %vm825_vm1, %v722_v44 }
  0x36   :  { %730 = vmatprep.subr.msk.bf16.mxu0 %vm825_vm1, %v728_v51  ;;  %741 = vmatprep.subr.msk.bf16.mxu1 %vm825_vm1, %v728_v51 }
  0x37   :  { %137 = vperm.xlu0 %752, %v67_v52   ;;  %481 = vperm.xlu1 %753, %v419_v53  }
  0x3b   :  { %142 = vperm.xlu0 %752, %v68_v54   ;;  %486 = vperm.xlu1 %753, %v420_v55  }
  0x3d   :  { %733 = vmatpush3.bf16.xpose.msk.msra.mxu0 %vm825_vm1, %v728_v51  ;;  %749 = vmatpush3.bf16.xpose.msk.msra.mxu1 %vm825_vm1, %v728_v51 }
  0x3f   :  { %147 = vperm.xlu0 %752, %v69_v56   ;;  %491 = vperm.xlu1 %753, %v421_v57  }
  0x43   :  { %496 = vperm.xlu0 %752, %v422_v58   ;;  %501 = vperm.xlu1 %753, %v423_v63  }
  0x44   :  { %663 = vmatmul.mubr.msk.f32.vlgmr.msra.gmra.mrb[0].mxu0 %vm150_vm0, %v23_v59  ;;  %675 = vmatmul.mubr.msk.f32.vlgmr.msra.gmra.mrb[0].mxu1 %vm150_vm0, %v31_v60 }
  0x45   :  { %665 = vmatprep.mubr.msk.f32.mxu0 %vm150_vm0, %v24_v61  ;;  %677 = vmatprep.mubr.msk.f32.mxu1 %vm150_vm0, %v32_v62 }
  0x48   :  { %666 = vmatmul.mubr.msk.f32.gmra.mrb[2].mxu0 %vm150_vm0, %v25_v0  ;;  %678 = vmatmul.mubr.msk.f32.gmra.mrb[2].mxu1 %vm150_vm0, %v33_v1 }
  0x49   :  { %668 = vmatprep.mubr.msk.f32.mxu0 %vm150_vm0, %v26_v2  ;;  %680 = vmatprep.mubr.msk.f32.mxu1 %vm150_vm0, %v34_v3 }
  0x4c   :  { %669 = vmatmul.mubr.msk.f32.gmra.mrb[4].mxu0 %vm150_vm0, %v27_v4  ;;  %681 = vmatmul.mubr.msk.f32.gmra.mrb[4].mxu1 %vm150_vm0, %v35_v5 }
  0x4d   :  { %671 = vmatprep.mubr.msk.f32.mxu0 %vm150_vm0, %v28_v6  ;;  %683 = vmatprep.mubr.msk.f32.mxu1 %vm150_vm0, %v36_v7 }
  0x50   :  { %672 = vmatmul.mubr.msk.f32.gmra.mrb[6].mxu0 %vm150_vm0, %v29_v8  ;;  %684 = vmatmul.mubr.msk.f32.gmra.mrb[6].mxu1 %vm150_vm0, %v37_v9 }
  0x86   :  { %v73_v10 = vpop.permute.xlu0 %72  ;;  %v83_v11 = vpop.permute.xlu1 %82 }
  0x8a   :  { %v78_v12 = vpop.permute.xlu0 %77  ;;  %v88_v13 = vpop.permute.xlu1 %87 }
  0x8e   :  { %v427_v14 = vpop.permute.xlu0 %426  ;;  %v432_v15 = vpop.permute.xlu1 %431 }
  0x92   :  { %v93_v16 = vpop.permute.xlu0 %92  ;;  %v437_v17 = vpop.permute.xlu1 %436 }
  0x96   :  { %v98_v18 = vpop.permute.xlu0 %97  ;;  %v442_v19 = vpop.permute.xlu1 %441 }
  0x9a   :  { %v103_v20 = vpop.permute.xlu0 %102  ;;  %v447_v21 = vpop.permute.xlu1 %446 }
  0x9e   :  { %v108_v22 = vpop.permute.xlu0 %107  ;;  %v452_v23 = vpop.permute.xlu1 %451 }
  0xa2   :  { %v113_v24 = vpop.permute.xlu0 %112  ;;  %v457_v25 = vpop.permute.xlu1 %456 }
  0xa6   :  { %v118_v26 = vpop.permute.xlu0 %117  ;;  %v462_v27 = vpop.permute.xlu1 %461 }
  0xaa   :  { %v123_v28 = vpop.permute.xlu0 %122  ;;  %v467_v29 = vpop.permute.xlu1 %466 }
  0xae   :  { %v128_v30 = vpop.permute.xlu0 %127  ;;  %v472_v37 = vpop.permute.xlu1 %471 }
  0xb2   :  { %v133_v48 = vpop.permute.xlu0 %132  ;;  %v477_v59 = vpop.permute.xlu1 %476 }
  0xb6   :  { %v138_v9 = vpop.permute.xlu0 %137 }
 0x117   :  { %v664_v31 = vpop.f32.mrb[0].mxu0  ;;  %v676_v32 = vpop.f32.mrb[0].mxu1 }
 0x118   :  { %v319_v33 = vadd.f32 %v664_v31, %v78_v12  ;;  %v313_v34 = vpop.f32.mrb[1].mxu0  ;;  %v353_v35 = vpop.f32.mrb[1].mxu1 }
 0x119   :  { %v314_v36 = vadd.f32 %v313_v34, %v73_v10  ;;  %v354_v5 = vadd.f32 %v353_v35, %v113_v24  ;;  %v359_v10 = vadd.f32 %v676_v32, %v118_v26 }
 0x11a   :  { %v393_v38 = vmax.f32 %v319_v33, 0.0 }
 0x11b   :  { %v392_v39 = vmax.f32 %v314_v36, 0.0  ;;  %v667_v40 = vpop.f32.mrb[2].mxu0  ;;  %v679_v41 = vpop.f32.mrb[2].mxu1  ;;  %v401_v31 = vmax.f32 %v359_v10, 0.0 }
 0x11c   :  { %v505_v42 = vmul.f32 %v432_v15, %v393_v38  ;;  %v329_v43 = vadd.f32 %v667_v40, %v88_v13  ;;  %v323_v44 = vpop.f32.mrb[3].mxu0  ;;  %v363_v45 = vpop.f32.mrb[3].mxu1  ;;  %v369_v33 = vadd.f32 %v679_v41, %v128_v30 }
 0x11d   :  { %v504_v46 = vmul.f32 %v427_v14, %v392_v39  ;;  %v324_v47 = vadd.f32 %v323_v44, %v83_v11  ;;  %v482_v15 = vpop.permute.xlu1 %481  ;;  %v143_v36 = vpop.permute.xlu0 %142  ;;  %v513_v26 = vmul.f32 %v472_v37, %v401_v31 }
 0x11e   :  { %v395_v50 = vmax.f32 %v329_v43, 0.0 }
 0x11f   :  { %v520_v49 = vadd.f32 %v505_v42, %v504_v46  ;;  %v394_v51 = vmax.f32 %v324_v47, 0.0  ;;  %v670_v52 = vpop.f32.mrb[4].mxu0  ;;  %v682_v53 = vpop.f32.mrb[4].mxu1 }
 0x120   :  { %v339_v54 = vadd.f32 %v670_v52, %v98_v18  ;;  %v333_v55 = vpop.f32.mrb[5].mxu0  ;;  %v373_v56 = vpop.f32.mrb[5].mxu1  ;;  %v507_v60 = vmul.f32 %v442_v19, %v395_v50  ;;  %v379_v32 = vadd.f32 %v682_v53, %v138_v9 }
 0x121   :  { %v506_v57 = vmul.f32 %v437_v17, %v394_v51  ;;  %v334_v58 = vadd.f32 %v333_v55, %v93_v16  ;;  %v400_v16 = vmax.f32 %v354_v5, 0.0  ;;  %v364_v17 = vadd.f32 %v363_v45, %v123_v28  ;;  %v487_v38 = vpop.permute.xlu1 %486 }
 0x122   :  { %v397_v62 = vmax.f32 %v339_v54, 0.0  ;;  %v374_v35 = vadd.f32 %v373_v56, %v133_v48  ;;  %v405_v45 = vmax.f32 %v379_v32, 0.0 }
 0x123   :  { %v521_v61 = vadd.f32 %v520_v49, %v506_v57  ;;  %v396_v63 = vmax.f32 %v334_v58, 0.0  ;;  %v673_v0 = vpop.f32.mrb[6].mxu0  ;;  %v685_v1 = vpop.f32.mrb[6].mxu1  ;;  %v512_v24 = vmul.f32 %v467_v29, %v400_v16 }
 0x124   :  { %v349_v2 = vadd.f32 %v673_v0, %v108_v22  ;;  %v343_v3 = vpop.f32.mrb[7].mxu0  ;;  %v383_v4 = vpop.f32.mrb[7].mxu1  ;;  %v509_v11 = vmul.f32 %v452_v23, %v397_v62  ;;  %v403_v23 = vmax.f32 %v369_v33, 0.0  ;;  %v404_v42 = vmax.f32 %v374_v35, 0.0 }
 0x125   :  { %v508_v6 = vmul.f32 %v447_v21, %v396_v63  ;;  %v522_v7 = vadd.f32 %v521_v61, %v507_v60  ;;  %v344_v8 = vadd.f32 %v343_v3, %v103_v20  ;;  %v402_v21 = vmax.f32 %v364_v17, 0.0  ;;  %v492_v41 = vpop.permute.xlu1 %491 }
 0x126   :  { %v399_v13 = vmax.f32 %v349_v2, 0.0  ;;  %v384_v28 = vadd.f32 %v383_v4, %v143_v36  ;;  %v515_v44 = vmul.f32 %v482_v15, %v403_v23  ;;  %v516_v46 = vmul.f32 %v487_v38, %v404_v42 }
 0x127   :  { %v523_v12 = vadd.f32 %v522_v7, %v508_v6  ;;  %v398_v14 = vmax.f32 %v344_v8, 0.0  ;;  %v514_v40 = vmul.f32 %v477_v59, %v402_v21  ;;  %v517_v48 = vmul.f32 %v492_v41, %v405_v45 }
 0x128   :  { %v511_v22 = vmul.f32 %v462_v27, %v399_v13  ;;  %v406_v29 = vmax.f32 %v384_v28, 0.0  ;;  %v542_v62 = vstv %s1111_s4 }
 0x129   :  { %v510_v18 = vmul.f32 %v457_v25, %v398_v14  ;;  %v524_v19 = vadd.f32 %v523_v12, %v509_v11  ;;  %v148_v25 = vpop.permute.xlu0 %147  ;;  %v502_v53 = vpop.permute.xlu1 %501 }
 0x12a   :  { %v389_v30 = vadd.f32 %v685_v1, %v148_v25 }
 0x12b   :  { %v525_v34 = vadd.f32 %v524_v19, %v510_v18 }
 0x12c   :  { %v407_v49 = vmax.f32 %v389_v30, 0.0 }
 0x12d   :  { %v526_v20 = vadd.f32 %v525_v34, %v511_v22  ;;  %v497_v37 = vpop.permute.xlu0 %496 }
 0x12e   :  { %v518_v51 = vmul.f32 %v497_v37, %v406_v29  ;;  %v519_v54 = vmul.f32 %v502_v53, %v407_v49 }
 0x12f   :  { %v527_v39 = vadd.f32 %v526_v20, %v512_v24 }
 0x131   :  { %v528_v43 = vadd.f32 %v527_v39, %v513_v26 }
 0x133   :  { %v529_v27 = vadd.f32 %v528_v43, %v514_v40 }
 0x135   :  { %v530_v47 = vadd.f32 %v529_v27, %v515_v44 }
 0x137   :  { %v531_v50 = vadd.f32 %v530_v47, %v516_v46 }
 0x139   :  { %v532_v52 = vadd.f32 %v531_v50, %v517_v48 }
 0x13b   :  { %v533_v55 = vadd.f32 %v532_v52, %v518_v51 }
 0x13d   :  { %v534_v56 = vadd.f32 %v533_v55, %v519_v54 }
 0x13f   :  { %v535_v57 = vrot.slane %v534_v56, 4 }
 0x141   :  { %v536_v58 = vadd.f32 %v535_v57, %v534_v56 }
 0x143   :  { %v537_v59 = vrot.slane %v536_v58, 2 }
 0x145   :  { %v538_v60 = vadd.f32 %v537_v59, %v536_v58 }
 0x147   :  { %v539_v61 = vrot.slane %v538_v60, 1 }
 0x149   :  { %v540_v63 = vadd.f32 %v539_v61, %v538_v60 }
 0x14b   :  { %v543_v0 = vadd.f32 %v542_v62, %v540_v63 }
 0x14d   :  { %v597_v1 = vmul.f32 -1.442695, %v543_v0 }
 0x14f   :  { %754 = vpow2.f32 %v597_v1 }
 0x159   :  { %v755_v2 = vpop.eup %754 }
 0x15a   :  { %v547_v3 = vadd.f32 1.0, %v755_v2 }
 0x15c   :  { %756 = vrcp.f32 %v547_v3 }
 0x166   :  { %v757_v4 = vpop.eup %756 }
 0x167   :  { %550 = vst [vmem:[#allocation3] sm:$0x1] %v757_v4 }
 0x168   :  { %769 = shalt.err (!%p766_p4)
}
 0x169   :  { %s770_s22 = scalar_lea.hbm %s1112_s5, 16 }
 0x16a   :  { %p771_p5 = scmp.ne.s32.totalorder %s1112_s5, %s770_s22  ;;  %p774_p6 = scmp.lt.u32.totalorder %s770_s22, %s1112_s5 }
 0x16c   :  { %p776_p7 = pnand %p774_p6, %p771_p5 }
 0x16e   :  { %779 = shalt.err (!%p776_p7)
}
 0x16f   :  { %560 = dma.vmem_to_hbm [thread:$0]  %s558_s18, 16, %s1112_s5, [#allocation4]  }
 0x170   :  { %780 = dma.done.wait [#allocation4], 16  }
 0x171   :  { %781 = vsyncadd [#allocation4], 4294967280 }
 0x172   :  { %564 = vsyncpa [#allocation4], 1 }

</bundles_post_ra>
